<compile_context>
chip_gen: v6e
topology: v6e:2x2x1
jax: 0.10.0
libtpu: 0.0.40
codegen_flags: <defaults>
</compile_context>

<pallas_src>
import math

import jax
import jax.numpy as jnp
import numpy as np
from jax.experimental import pallas as pl
from jax.experimental.pallas import tpu as pltpu


# ------------------------------- Pallas kernel -------------------------------

def _add_pe_kernel(x_ref, pe_ref, o_ref):
    # x_ref / o_ref: (TS1, TC) tile of one batch element (batch dim squeezed).
    # pe_ref:        (TS1, TC) tile of the positional-encoding table (shared by
    #                all batches; its BlockSpec ignores the batch grid axis).
    o_ref[...] = x_ref[...] + pe_ref[...]


# ------------------------------ table (like __init__) -------------------------

def make_positional_encoding(d_model, max_len=5000, dtype=jnp.float32):
    """Exact replica of the PyTorch __init__ table (also handles odd d_model)."""
    position = jnp.arange(0, max_len, dtype=jnp.float32)[:, None]              # (max_len, 1)
    div_term = jnp.exp(jnp.arange(0, d_model, 2, dtype=jnp.float32)
                       * (-math.log(10000.0) / d_model))                        # (ceil(d/2),)
    angles = position * div_term                                                 # (max_len, ceil(d/2))
    enc = jnp.zeros((max_len, d_model), jnp.float32)
    enc = enc.at[:, 0::2].set(jnp.sin(angles))
    enc = enc.at[:, 1::2].set(jnp.cos(angles[:, : d_model // 2]))
    return enc.astype(dtype)                                                     # (max_len, d_model)


# ------------------------------ tiling heuristics ------------------------------

_TILE_BUDGET_BYTES = 2 * 1024 * 1024       # per x tile; ~6 live tile buffers => ~12 MiB VMEM
_VMEM_LIMIT_BYTES = 48 * 1024 * 1024       # fits v5e/v6e (128 MiB) and v7x (64 MiB physical)
_SMALL_BYTES = 256 * 1024                  # below this, a standalone pallas_call cannot win


def _divisors(n):
    ds = set()
    i = 1
    while i * i <= n:
        if n % i == 0:
            ds.add(i)
            ds.add(n // i)
        i += 1
    return sorted(ds)


def _choose_seq_split(S, D):
    """Smallest S2 | S with (S2 * D) % 128 == 0 (lane-dense rows); else 1."""
    for s2 in _divisors(S):
        if (s2 * D) % 128 == 0:
            return s2
    return 1


def _choose_tiles(B, S1, C, itemsize, budget=_TILE_BUDGET_BYTES):
    """Pick (TS1, TC): sublane/lane tile sizes obeying the (8,128)-or-full rule,
    sized from a VMEM budget, with >= 2 total grid steps whenever the shape allows."""
    # ---- lane (last-dim) tile: a multiple of 128, or the full row width ----
    if C % 128 == 0:
        lane_opts = [d for d in _divisors(C) if d % 128 == 0]
    else:
        lane_opts = [C]                                  # cannot split a non-aligned row
    lane_limit = budget // (8 * itemsize)
    fitting_lanes = [d for d in lane_opts if d <= lane_limit]
    tc = max(fitting_lanes) if fitting_lanes else min(lane_opts)

    # ---- sublane (second-to-last) tile: a multiple of 8, or the full S1 ----
    row_opts = [d for d in _divisors(S1) if d % 8 == 0 or d == S1]
    max_rows = max(1, budget // (tc * itemsize))
    fitting_rows = [d for d in row_opts if d <= max_rows]
    ts1 = max(fitting_rows) if fitting_rows else min(row_opts)

    # ---- guarantee >= 2 grid steps for v7x's two TensorCores when possible ----
    if B * (S1 // ts1) * (C // tc) < 2:
        smaller_rows = [d for d in row_opts if d < ts1]
        smaller_lanes = [d for d in lane_opts if d < tc]
        if smaller_rows:
            ts1 = max(smaller_rows)
        elif smaller_lanes:
            tc = max(smaller_lanes)
    return ts1, tc


# ----------------------------- wrapper / forward ------------------------------

def positional_encoding_forward(x, encoding, *, force_pallas=False):
    """forward(x) = x + encoding[:seq_len]   (broadcast over batch)."""
    assert x.ndim == 3, "expected (batch, seq, d_model)"
    B, S, D = x.shape
    pe = encoding[:S].astype(x.dtype)                    # static slice, dtype-matched (S, D)

    # Tiny inputs: a standalone kernel launch loses to XLA fusion -- bypass.
    if (not force_pallas) and x.size * x.dtype.itemsize < _SMALL_BYTES:
        return x + pe[None, :, :]

    itemsize = x.dtype.itemsize
    s2 = _choose_seq_split(S, D)                         # lane-dense factorization of S
    s1 = S // s2
    C = s2 * D

    x3 = x.reshape(B, s1, C)                             # layout-only reshapes
    pe2 = pe.reshape(s1, C)

    ts1, tc = _choose_tiles(B, s1, C, itemsize)
    grid = (s1 // ts1, C // tc, B)                       # batch innermost: PE tile reused across it

    out3 = pl.pallas_call(
        _add_pe_kernel,
        out_shape=jax.ShapeDtypeStruct((B, s1, C), x.dtype),
        grid=grid,
        in_specs=[
            pl.BlockSpec((None, ts1, tc), lambda i, j, b: (b, i, j)),  # x tile (batch squeezed)
            pl.BlockSpec((ts1, tc),       lambda i, j, b: (i, j)),     # PE tile (ignores batch)
        ],
        out_specs=pl.BlockSpec((None, ts1, tc), lambda i, j, b: (b, i, j)),
        input_output_aliases={0: 0},                     # x and out: same shape/dtype
        compiler_params=pltpu.CompilerParams(
            dimension_semantics=("parallel", "parallel", "parallel"),
            vmem_limit_bytes=_VMEM_LIMIT_BYTES,
        ),
    )(x3, pe2)

    return out3.reshape(B, S, D)


# ------------------------------------ main ------------------------------------

if __name__ == "__main__":
    key = jax.random.PRNGKey(0)

    # ---- demo shape implied by the module: batch=2, seq=8, d_model=32 ----
    B, S, D_MODEL, MAX_LEN = 2, 8, 32, 5000
    x = jax.random.normal(key, (B, S, D_MODEL), jnp.float32)
    encoding = make_positional_encoding(D_MODEL, MAX_LEN)            # built once, like __init__

    ref = x + encoding[None, :S, :]
    out = positional_encoding_forward(x, encoding, force_pallas=True)  # force kernel at tiny size
    out = jax.block_until_ready(out)
    np.testing.assert_allclose(np.asarray(out), np.asarray(ref), rtol=1e-6, atol=1e-6)

    # ---- larger, lane/sublane-dense shape: exercises row tiling + batch reuse ----
    k2 = jax.random.PRNGKey(1)
    B2, S2, D2 = 2, 4096, 256
    x2 = jax.random.normal(k2, (B2, S2, D2), jnp.float32)
    enc2 = make_positional_encoding(D2, 4096)
    out2 = jax.block_until_ready(positional_encoding_forward(x2, enc2))
    np.testing.assert_allclose(np.asarray(out2), np.asarray(x2 + enc2[None, :S2, :]),
                               rtol=1e-6, atol=1e-6)

    # ---- odd / non-128-aligned d_model: exercises the full-row fallback path ----
    k3 = jax.random.PRNGKey(2)
    B3, S3, D3 = 2, 16, 33
    x3 = jax.random.normal(k3, (B3, S3, D3), jnp.float32)
    enc3 = make_positional_encoding(D3, 64)
    out3 = jax.block_until_ready(positional_encoding_forward(x3, enc3, force_pallas=True))
    np.testing.assert_allclose(np.asarray(out3), np.asarray(x3 + enc3[None, :S3, :]),
                               rtol=1e-6, atol=1e-6)

    print("KERNEL_OK")
</pallas_src>

<mosaic_0001>
module attributes {stable_mosaic.version = 11 : i64} {
  func.func @_add_pe_kernel(%arg0: i32, %arg1: i32, %arg2: i32, %arg3: memref<1x2x128xf32, #tpu.memory_space<vmem>>, %arg4: memref<2x128xf32, #tpu.memory_space<vmem>>, %arg5: memref<1x2x128xf32, #tpu.memory_space<vmem>>) attributes {dimension_semantics = [#tpu.dimension_semantics<parallel>, #tpu.dimension_semantics<parallel>, #tpu.dimension_semantics<parallel>], iteration_bounds = array<i64: 1, 1, 2>, scalar_prefetch = 0 : i64, scratch_operands = 0 : i64, tpu.core_type = #tpu.core_type<tc>, window_params = [{transform_indices = @transform_0, window_bounds = array<i64: 1, 2, 128>}, {transform_indices = @transform_1, window_bounds = array<i64: 2, 128>}, {transform_indices = @transform_2, window_bounds = array<i64: 1, 2, 128>}]} {
    %c0 = arith.constant 0 : index
    %c0_0 = arith.constant 0 : index
    %c0_1 = arith.constant 0 : index
    %0 = vector.load %arg3[%c0, %c0_0, %c0_1] : memref<1x2x128xf32, #tpu.memory_space<vmem>>, vector<1x2x128xf32>
    %1 = vector.shape_cast %0 : vector<1x2x128xf32> to vector<2x128xf32>
    %c0_2 = arith.constant 0 : index
    %c0_3 = arith.constant 0 : index
    %2 = vector.load %arg4[%c0_2, %c0_3] : memref<2x128xf32, #tpu.memory_space<vmem>>, vector<2x128xf32>
    %3 = arith.addf %1, %2 : vector<2x128xf32>
    %c0_4 = arith.constant 0 : index
    %c0_5 = arith.constant 0 : index
    %c0_6 = arith.constant 0 : index
    %4 = vector.load %arg5[%c0_4, %c0_5, %c0_6] : memref<1x2x128xf32, #tpu.memory_space<vmem>>, vector<1x2x128xf32>
    %5 = vector.shape_cast %4 : vector<1x2x128xf32> to vector<2x128xf32>
    %6 = vector.shape_cast %3 : vector<2x128xf32> to vector<1x2x128xf32>
    tpu.vector_store %arg5[%c0_4, %c0_5, %c0_6], %6 {strides = array<i32>} : memref<1x2x128xf32, #tpu.memory_space<vmem>>, vector<1x2x128xf32>,
    return
  }
  func.func @transform_0(%arg0: i32, %arg1: i32, %arg2: i32) -> (i32, i32, i32) {
    %c0_i32 = arith.constant 0 : i32
    return %arg2, %arg0, %arg1 : i32, i32, i32
  }
  func.func @transform_1(%arg0: i32, %arg1: i32, %arg2: i32) -> (i32, i32) {
    %c0_i32 = arith.constant 0 : i32
    return %arg0, %arg1 : i32, i32
  }
  func.func @transform_2(%arg0: i32, %arg1: i32, %arg2: i32) -> (i32, i32, i32) {
    %c0_i32 = arith.constant 0 : i32
    return %arg2, %arg0, %arg1 : i32, i32, i32
  }
}

</mosaic_0001>

<bundles_post_ra>
// kernel: tpu_custom_call.1
= control target key start
LH: loop header
LB: loop body
LE: loop exit
PB: predicated region body
PF: predicated region fallthrough
CT: control target
= control target key end

     0   :  { %7 = vsyncpa [#allocation3], 0  ;;  %s679_s0 = inlined_call_operand.hbm [shape: f32[2,2,128], index: 0, kind: input, shape index: {}, may-alias: {0,2}]   ;;  %s680_s1 = inlined_call_operand.vmem [shape: f32[2,128], index: 1, kind: input, shape index: {}]   ;;  %s681_s2 = inlined_call_operand.hbm [shape: f32[2,2,128], index: 2, kind: output, shape index: {}, may-alias: {0,2}]  }
   0x1   :  { %9 = vsyncpa [#allocation3 + $0x1], 0 }
   0x2   :  { %10 = vsyncpa [#allocation4], 0 }
   0x3   :  { %12 = vsyncpa [#allocation4 + $0x1], 0  ;;  %s542_s9 = smov 0   ;;  %s544_s10 = smov 0  }
   0x4   :  { %s546_s11 = smov 0   ;;  %s548_s12 = smov 0  }
   0x5   :  { %s550_s13 = smov 0   ;;  %s552_s14 = smov 0  }
   0x6 LB: > { %s339_s15 = sadd.s32 4294967295, %s523_s14   ;;  %s340_s16 = sadd.s32 4294967294, %s523_s14   ;;  %s523_s14 = sphi %s552_s14, %s18_s14   ;;  %s519_s13 = sphi %s550_s13, %s693_s13   ;;  %s515_s12 = sphi %s548_s12, %s692_s12   ;;  %s511_s11 = sphi %s546_s11, %s691_s11   ;;  %s507_s10 = sphi %s544_s10, %s690_s10   ;;  %s503_s9 = sphi %s542_s9, %s689_s9  }
   0x7   : > { %s30_s17 = sadd.s32 1, %s519_s13  ;;  %s48_s18 = sadd.s32 1, %s511_s11 }
   0x8   : > { %p31_p0 = scmp.ge.s32.totalorder %s30_s17, 2  ;;  %p55_p1 = scmp.ne.s32.totalorder %s511_s11, %s507_s10 }
   0x9   : > { %p56_p2 = scmp.eq.s32.totalorder %s523_s14, 0  ;;  %p61_p3 = scmp.ne.s32.totalorder %s507_s10, %s503_s9 }
   0xa   : > { %s695_s17 = smov (%p31_p0, %s30_s17), 0  ;;  %p62_p5 = scmp.eq.s32.totalorder %s339_s15, 0 }
   0xb   : > { %p583_p4 = por %p56_p2, %p55_p1  ;;  %s41_s20 = ssub.s32 %s519_s13, %s695_s17 }
   0xc   : > { %p117_p6 = scmp.eq.s32.totalorder %s339_s15, 1  ;;  %p46_p7 = scmp.eq.s32.totalorder %s41_s20, 0 }
   0xd   : > { %p589_p8 = por %p62_p5, %p61_p3  ;;  %p123_p10 = scmp.eq.s32.totalorder %s340_s16, 1 }
   0xe   : > { %p593_p9 = por %p117_p6, %p55_p1  ;;  %p365_p13 = scmp.lt.s32.totalorder %s523_s14, 2 }
   0xf   : > { %s598_s23 = scalar_select %p46_p7, %s511_s11, %s48_s18  }
  0x10   : > { %p600_p11 = por %p123_p10, %p61_p3  ;;  %s153_s25 = sand.u32 1, %s511_s11  }
  0x11   : > { %s344_s26 = sshll.u32 %s153_s25, 1  ;;  %s345_s27 = sshll.u32 %s519_s13, 5 }
  0x12   : > { %s685_s24 = scalar_select %p600_p11, 1, 0 }
  0x13   : > { %s164_s30 = scalar_lea.hbm %s679_s0, %s345_s27  ;;  %s157_s3 = scalar_lea.vmem [#allocation2], %s344_s26 }
  0x14   : > { %s166_s4 = sshll.u32 %s157_s3, 4  ;;  %p613_p0 = pnand %p365_p13, %p583_p4  ;;  %s167_s4 = int_to_ptr.vmem [resolvable:$true] %s166_s4 }
  0x15   : > { %p346_p1 = scmp.ge.s32.totalorder %s523_s14, 1  ;;  %p171_p2 = scmp.lt.s32.totalorder %s523_s14, 3 }
  0x16   : > { %s154_s6 = scalar_lea.sflag [#allocation3], %s153_s25  ;;  %p417_p3 = pneg %p613_p0 }
  0x17   : > { %s428_s7 = scalar_lea.vmem %s167_s4, 32  ;;  %s525_s8 = smov [#allocation2]  }
  0x18   : > { %p429_p5 = scmp.ne.s32.totalorder %s167_s4, %s428_s7  ;;  %s433_s15 = sshll.u32 %s525_s8, 4  ;;  %s434_s15 = int_to_ptr.vmem [resolvable:$false] %s433_s15 }
  0x19   : > { %s435_s16 = scalar_lea.vmem %s434_s15, 64  ;;  %p436_p10 = scmp.lt.s32.totalorder %s167_s4, %s434_s15 }
  0x1a   : > { %p431_p6 = pnand %p429_p5, %p417_p3  ;;  %p437_p12 = scmp.lt.s32.totalorder %s435_s16, %s428_s7 }
  0x1c   : > { %p432_p7 = pneg %p431_p6  ;;  %p438_p4 = por %p437_p12, %p436_p10 }
  0x1e   : > { %p439_p13 = pnand %p438_p4, %p432_p7 }
  0x20   : > { %442 = shalt.err (!%p439_p13)
}
  0x21   : > { %360 = dma.hbm_to_vmem [thread:$0]  (!%p613_p0), %s164_s30, 32, %s167_s4, %s154_s6  }
  0x22   : > { %p172_p11 = pnand %p346_p1, %p171_p2 }
  0x23   : > { %s628_s18 = sand.u32 (!%p172_p11), 1, %s507_s10  }
  0x24   : > { %175 = sbr.rel (%p172_p11) target bundleno = 66 (0x42), region = 28  ;;  %s347_s19 = sshll.u32 (!%p172_p11), %s628_s18, 1 }
  0x25   : > { %s178_s20 = scalar_lea.sflag (!%p172_p11), [#allocation3], %s628_s18  ;;  %s181_s25 = scalar_lea.vmem (!%p172_p11), [#allocation2], %s347_s19 }
  0x29   : > { %494 = dma.done.wait (%p589_p8), %s178_s20, 32  }
  0x2a   : > { %496 = vsyncadd (%p589_p8), %s178_s20, 4294967264  ;;  %s208_s26 = scalar_lea.vmem [#allocation5], %s347_s19  ;;  %s350_s28 = sshll.u32 %s515_s12, 5  ;;  %v216_v0 = vld [vmem:[%s181_s25] sm:$0x3] }
  0x2b   : > { %s236_s27 = sshll.u32 %s208_s26, 4  ;;  %v217_v1 = vld [vmem:[%s680_s1] sm:$0x3]  ;;  %s234_s5 = scalar_lea.hbm %s681_s2, %s350_s28  ;;  %s237_s27 = int_to_ptr.vmem [resolvable:$true] %s236_s27 }
  0x2c   : > { %v218_v2 = vadd.f32 %v217_v1, %v216_v0  ;;  %s221_s21 = scalar_lea.sflag [#allocation4], %s628_s18  ;;  %s443_s6 = scalar_lea.vmem %s237_s27, 32 }
  0x2d   : > { %p444_p8 = scmp.ne.s32.totalorder %s237_s27, %s443_s6  ;;  %s526_s7 = smov [#allocation5]  }
  0x2e   : > { %219 = vst [vmem:[%s208_s26] sm:$0x3] %v218_v2  ;;  %s447_s12 = sshll.u32 %s526_s7, 4  ;;  %s448_s12 = int_to_ptr.vmem [resolvable:$false] %s447_s12 }
  0x2f   : > { %p445_p11 = pnand %p444_p8, %p593_p9  ;;  %s449_s8 = scalar_lea.vmem %s448_s12, 64 }
  0x30   : > { %p450_p0 = scmp.lt.s32.totalorder %s237_s27, %s448_s12  ;;  %p451_p1 = scmp.lt.s32.totalorder %s449_s8, %s443_s6 }
  0x31   : > { %p446_p12 = pneg %p445_p11 }
  0x32   : > { %p452_p2 = por %p451_p1, %p450_p0 }
  0x34   : > { %p453_p3 = pnand %p452_p2, %p446_p12 }
  0x36   : > { %456 = shalt.err (!%p453_p3)
}
  0x37   : > { %s457_s15 = scalar_lea.hbm %s234_s5, 32  ;;  %s461_s19 = scalar_lea.hbm %s681_s2, 64 }
  0x38   : > { %p458_p5 = scmp.ne.s32.totalorder %s234_s5, %s457_s15  ;;  %p462_p10 = scmp.lt.s32.totalorder %s234_s5, %s681_s2 }
  0x39   : > { %p463_p4 = scmp.lt.s32.totalorder %s461_s19, %s457_s15 }
  0x3a   : > { %p459_p6 = pnand %p458_p5, %p593_p9 }
  0x3b   : > { %p464_p13 = por %p463_p4, %p462_p10 }
  0x3c   : > { %p460_p7 = pneg %p459_p6 }
  0x3e   : > { %p465_p8 = pnand %p464_p13, %p460_p7 }
  0x40   : > { %468 = shalt.err (!%p465_p8)
}
  0x41   : > { %355 = dma.vmem_to_hbm [thread:$0]  (%p593_p9), %s237_s27, 32, %s234_s5, %s221_s21  }
  0x42 PF: > { %s248_s26 = sand.u32 1, %s503_s9   ;;  %p687_p11 = scmp.ne.s32.totalorder %s685_s24, 0 }
  0x43   : > { %p688_p12 = scmp.ge.s32.totalorder %s523_s14, 2  ;;  %s249_s28 = scalar_lea.sflag [#allocation4], %s248_s26 }
  0x45   : > { %p362_p0 = pnand %p688_p12, %p687_p11 }
  0x47   : > { %p363_p1 = pneg %p362_p0 }
  0x49   : > { %498 = dma.done.wait (%p363_p1), %s249_s28, 32  }
  0x4a   : > { %500 = vsyncadd (%p363_p1), %s249_s28, 4294967264  ;;  %s18_s14 = sadd.s32 1, %s523_s14   ;;  %s689_s9 = smov %s507_s10 }
  0x4b   : > { %p15_p2 = scmp.ge.s32.totalorder %s18_s14, 4   ;;  %s690_s10 = smov %s511_s11 }
  0x4c   : > { %s691_s11 = smov %s598_s23  ;;  %s692_s12 = smov %s519_s13 }
  0x4d   : > { %s693_s13 = smov %s695_s17  ;;  %17 = sbr.rel (!%p15_p2) target bundleno = 6 (0x6), region = 76 }
  0x52   :  { %254 = vsyncpa [#allocation3], 1 }
  0x53   :  { %256 = vsyncpa [#allocation3 + $0x1], 1 }
  0x54   :  { %257 = vsyncpa [#allocation4], 1 }
  0x55   :  { %259 = vsyncpa [#allocation4 + $0x1], 1 }

</bundles_post_ra>
